<compile_context>
chip_gen: v7x
topology: tpu7x:2x2x1
jax: 0.10.0
libtpu: 0.0.40
codegen_flags: <defaults>
</compile_context>

<pallas_src>
import math

import jax
import jax.numpy as jnp
from jax import lax
from jax.experimental import pallas as pl
from jax.experimental.pallas import tpu as pltpu

_LANES = 128
_MAX_TILE_ROWS = 1024  # 1024x128 f32 = 512 KiB / input block; 2 MiB double-buffered


def _make_kernel(inv_sigma_sqrt2, total, tile_rows, padded_total):
    inv_total = 1.0 / float(total)
    needs_mask = padded_total != total

    def kernel(pred_ref, target_ref, out_ref, acc_ref):
        i = pl.program_id(0)

        @pl.when(i == 0)
        def _():
            acc_ref[...] = jnp.zeros_like(acc_ref)

        pred = pred_ref[...].astype(jnp.float32)
        target = target_ref[...].astype(jnp.float32)

        # |cdf(pred) - cdf(2*target - pred)| == |erf(z)|   (z2 = -z1, erf odd)
        z = (pred - target) * jnp.float32(inv_sigma_sqrt2)
        log_prob = jnp.log(jnp.float32(1.0000000001) - jnp.abs(lax.erf(z)))

        if needs_mask:
            row_ids = (
                lax.broadcasted_iota(jnp.int32, (tile_rows, _LANES), 0)
                + i * tile_rows
            )
            col_ids = lax.broadcasted_iota(jnp.int32, (tile_rows, _LANES), 1)
            gidx = row_ids * _LANES + col_ids
            log_prob = jnp.where(gidx < total, log_prob, jnp.float32(0.0))

        acc_ref[...] = acc_ref[...] + jnp.sum(log_prob)

        @pl.when(i == pl.num_programs(0) - 1)
        def _():
            out_ref[...] = -acc_ref[...] * jnp.float32(inv_total)

    return kernel


def gaussian_loss(pred, target, sigma):
    """pred, target: same-shape float arrays. sigma: Python float. Returns f32 scalar."""
    assert pred.shape == target.shape
    total = int(pred.size)

    # Lane-dense layout: flatten to (rows, 128); pad rows up to a multiple of
    # the tile size (padding contributes exactly zero via the in-kernel mask).
    rows = pl.cdiv(total, _LANES)
    tile_rows = min(_MAX_TILE_ROWS, ((rows + 7) // 8) * 8)
    padded_rows = pl.cdiv(rows, tile_rows) * tile_rows
    padded_total = padded_rows * _LANES

    def lane_dense(x):
        x = x.reshape(-1)
        pad = padded_total - total
        if pad:
            x = jnp.pad(x, (0, pad))
        return x.reshape(padded_rows, _LANES)

    p2 = lane_dense(pred)
    t2 = lane_dense(target)

    inv_sigma_sqrt2 = 1.0 / (float(sigma) * math.sqrt(2.0))
    kernel = _make_kernel(inv_sigma_sqrt2, total, tile_rows, padded_total)

    grid = (padded_rows // tile_rows,)
    in_spec = pl.BlockSpec((tile_rows, _LANES), lambda i: (i, 0))

    out = pl.pallas_call(
        kernel,
        out_shape=jax.ShapeDtypeStruct((1, 1), jnp.float32),
        grid_spec=pltpu.PrefetchScalarGridSpec(
            num_scalar_prefetch=0,
            grid=grid,
            in_specs=[in_spec, in_spec],
            out_specs=pl.BlockSpec((1, 1), lambda i: (0, 0)),
            scratch_shapes=[pltpu.VMEM((1, 1), jnp.float32)],
        ),
        compiler_params=pltpu.CompilerParams(
            dimension_semantics=("arbitrary",),
        ),
    )(p2, t2)
    return out[0, 0]


class GaussianLossPallas:
    """Mirror of the PyTorch module. sigma is a constant, so it is kept as a
    Python float and baked into the kernel at trace time (no (N, N) buffer)."""

    def __init__(self, N, sigma=0.3):
        self.N = N
        self.sigma = float(sigma)

    def __call__(self, pred, target):
        return gaussian_loss(pred, target, self.sigma)


def _reference(pred, target, sigma_scalar):
    # Pure-JAX transcription of the PyTorch forward (two CDFs, full formula).
    sigma = jnp.full(pred.shape, sigma_scalar, dtype=jnp.float32)
    z1 = (pred - target) / (sigma * jnp.sqrt(2.0))
    z2 = ((2.0 * target - pred) - target) / (sigma * jnp.sqrt(2.0))
    b1 = 0.5 * (1.0 + lax.erf(z1))
    b2 = 0.5 * (1.0 + lax.erf(z2))
    return -jnp.mean(jnp.log(1.0000000001 - jnp.abs(b1 - b2)))


if __name__ == "__main__":
    N = 16
    key = jax.random.PRNGKey(0)
    k1, k2 = jax.random.split(key)
    target = jax.random.normal(k1, (N, N), dtype=jnp.float32)
    pred = target + 0.1 * jax.random.normal(k2, (N, N), dtype=jnp.float32)

    module = GaussianLossPallas(N, sigma=0.3)
    loss = module(pred, target)
    jax.block_until_ready(loss)

    ref = _reference(pred, target, module.sigma)
    assert jnp.allclose(loss, ref, rtol=1e-5, atol=1e-5), (loss, ref)
    print("KERNEL_OK")
</pallas_src>

<mosaic_0001>
module attributes {stable_mosaic.version = 11 : i64} {
  func.func @kernel(%arg0: i32, %arg1: memref<8x128xf32, #tpu.memory_space<vmem>>, %arg2: memref<8x128xf32, #tpu.memory_space<vmem>>, %arg3: memref<1x1xf32, #tpu.memory_space<vmem>>, %arg4: memref<1x1xf32, #tpu.memory_space<vmem>>) attributes {dimension_semantics = [#tpu.dimension_semantics<arbitrary>], iteration_bounds = array<i64: 1>, scalar_prefetch = 0 : i64, scratch_operands = 1 : i64, tpu.core_type = #tpu.core_type<tc>, window_params = [{transform_indices = @transform_0, window_bounds = array<i64: 8, 128>}, {transform_indices = @transform_1, window_bounds = array<i64: 8, 128>}, {pipeline_mode = #tpu.pipeline_mode<synchronous>, transform_indices = @transform_2, window_bounds = array<i64: 1, 1>}]} {
    %c0_i32 = arith.constant 0 : i32
    %0 = arith.cmpi eq, %arg0, %c0_i32 : i32
    %1 = arith.extui %0 : i1 to i32
    %c0_i32_0 = arith.constant 0 : i32
    %2 = arith.cmpi ne, %1, %c0_i32_0 : i32
    scf.if %2 {
      %cst_13 = arith.constant 0.000000e+00 : f32
      %36 = vector.broadcast %cst_13 : f32 to vector<1x1xf32>
      %c0_14 = arith.constant 0 : index
      %c0_15 = arith.constant 0 : index
      %37 = vector.load %arg4[%c0_14, %c0_15] : memref<1x1xf32, #tpu.memory_space<vmem>>, vector<1x1xf32>
      tpu.vector_store %arg4[%c0_14, %c0_15], %36 {strides = array<i32>} : memref<1x1xf32, #tpu.memory_space<vmem>>, vector<1x1xf32>,
    } else {
    }
    %c0 = arith.constant 0 : index
    %c0_1 = arith.constant 0 : index
    %3 = vector.load %arg1[%c0, %c0_1] : memref<8x128xf32, #tpu.memory_space<vmem>>, vector<8x128xf32>
    %c0_2 = arith.constant 0 : index
    %c0_3 = arith.constant 0 : index
    %4 = vector.load %arg2[%c0_2, %c0_3] : memref<8x128xf32, #tpu.memory_space<vmem>>, vector<8x128xf32>
    %5 = arith.subf %3, %4 : vector<8x128xf32>
    %cst = arith.constant 2.35702252 : f32
    %6 = vector.broadcast %cst : f32 to vector<8x128xf32>
    %7 = arith.mulf %5, %6 : vector<8x128xf32>
    %8 = math.erf %7 : vector<8x128xf32>
    %9 = math.absf %8 : vector<8x128xf32>
    %cst_4 = arith.constant 1.000000e+00 : f32
    %10 = vector.broadcast %cst_4 : f32 to vector<8x128xf32>
    %11 = arith.subf %10, %9 : vector<8x128xf32>
    %12 = math.log %11 : vector<8x128xf32>
    %13 = tpu.iota {dimensions = array<i32: 0>} : vector<8x128xi32>
    %c8_i32 = arith.constant 8 : i32
    %14 = arith.muli %arg0, %c8_i32 : i32
    %15 = vector.broadcast %14 : i32 to vector<8x128xi32>
    %16 = arith.addi %13, %15 : vector<8x128xi32>
    %17 = tpu.iota {dimensions = array<i32: 1>} : vector<8x128xi32>
    %c128_i32 = arith.constant 128 : i32
    %18 = vector.broadcast %c128_i32 : i32 to vector<8x128xi32>
    %19 = arith.muli %16, %18 : vector<8x128xi32>
    %20 = arith.addi %19, %17 : vector<8x128xi32>
    %c256_i32 = arith.constant 256 : i32
    %21 = vector.broadcast %c256_i32 : i32 to vector<8x128xi32>
    %22 = arith.cmpi slt, %20, %21 : vector<8x128xi32>
    %cst_5 = arith.constant 0.000000e+00 : f32
    %23 = vector.broadcast %cst_5 : f32 to vector<8x128xf32>
    %24 = arith.select %22, %12, %23 : vector<8x128xi1>, vector<8x128xf32>
    %c0_6 = arith.constant 0 : index
    %c0_7 = arith.constant 0 : index
    %25 = vector.load %arg4[%c0_6, %c0_7] : memref<1x1xf32, #tpu.memory_space<vmem>>, vector<1x1xf32>
    %26 = vector.shape_cast %24 : vector<8x128xf32> to vector<1x8x128xf32>
    %cst_8 = arith.constant dense<0.000000e+00> : vector<1xf32>
    %27 = vector.multi_reduction <add>, %26, %cst_8 [1, 2] : vector<1x8x128xf32> to vector<1xf32>
    %28 = vector.shape_cast %27 : vector<1xf32> to vector<1x1x1xf32>
    %29 = vector.extract %28[0, 0, 0] : f32 from vector<1x1x1xf32>
    %30 = vector.broadcast %29 : f32 to vector<1x1xf32>
    %31 = arith.addf %25, %30 : vector<1x1xf32>
    %c0_9 = arith.constant 0 : index
    %c0_10 = arith.constant 0 : index
    %32 = vector.load %arg4[%c0_9, %c0_10] : memref<1x1xf32, #tpu.memory_space<vmem>>, vector<1x1xf32>
    tpu.vector_store %arg4[%c0_9, %c0_10], %31 {strides = array<i32>} : memref<1x1xf32, #tpu.memory_space<vmem>>, vector<1x1xf32>,
    %c0_i32_11 = arith.constant 0 : i32
    %33 = arith.cmpi eq, %arg0, %c0_i32_11 : i32
    %34 = arith.extui %33 : i1 to i32
    %c0_i32_12 = arith.constant 0 : i32
    %35 = arith.cmpi ne, %34, %c0_i32_12 : i32
    scf.if %35 {
      %c0_13 = arith.constant 0 : index
      %c0_14 = arith.constant 0 : index
      %36 = vector.load %arg4[%c0_13, %c0_14] : memref<1x1xf32, #tpu.memory_space<vmem>>, vector<1x1xf32>
      %cst_15 = arith.constant 0.000000e+00 : f32
      %37 = vector.broadcast %cst_15 : f32 to vector<1x1xf32>
      %38 = arith.subf %37, %36 : vector<1x1xf32>
      %cst_16 = arith.constant 3.906250e-03 : f32
      %39 = vector.broadcast %cst_16 : f32 to vector<1x1xf32>
      %40 = arith.mulf %38, %39 : vector<1x1xf32>
      %c0_17 = arith.constant 0 : index
      %c0_18 = arith.constant 0 : index
      %41 = vector.load %arg3[%c0_17, %c0_18] : memref<1x1xf32, #tpu.memory_space<vmem>>, vector<1x1xf32>
      tpu.vector_store %arg3[%c0_17, %c0_18], %40 {strides = array<i32>} : memref<1x1xf32, #tpu.memory_space<vmem>>, vector<1x1xf32>,
    } else {
    }
    return
  }
  func.func @transform_0(%arg0: i32) -> (i32, i32) {
    %c0_i32 = arith.constant 0 : i32
    %c0_i32_0 = arith.constant 0 : i32
    return %arg0, %c0_i32 : i32, i32
  }
  func.func @transform_1(%arg0: i32) -> (i32, i32) {
    %c0_i32 = arith.constant 0 : i32
    %c0_i32_0 = arith.constant 0 : i32
    return %arg0, %c0_i32 : i32, i32
  }
  func.func @transform_2(%arg0: i32) -> (i32, i32) {
    %c0_i32 = arith.constant 0 : i32
    %c0_i32_0 = arith.constant 0 : i32
    %c0_i32_1 = arith.constant 0 : i32
    return %c0_i32, %c0_i32_0 : i32, i32
  }
}

</mosaic_0001>

<bundles_post_ra>
// kernel: tpu_custom_call.1
= control target key start
LH: loop header
LB: loop body
LE: loop exit
PB: predicated region body
PF: predicated region fallthrough
CT: control target
= control target key end

     0   :  { %7 = vsyncpa [#allocation4], 0  ;;  %s239_s0 = inlined_call_operand.hbm [shape: f32[8,128], index: 0, kind: input, shape index: {}]   ;;  %s240_s1 = inlined_call_operand.hbm [shape: f32[8,128], index: 1, kind: input, shape index: {}]   ;;  %s241_s2 = inlined_call_operand.hbm [shape: f32[1,1], index: 2, kind: output, shape index: {}]  }
   0x1   :  { %8 = vsyncpa [#allocation7], 0 }
   0x2   :  { %9 = vsyncpa [#allocation5], 0  ;;  %s181_s9 = smov [#allocation3]   ;;  %s182_s11 = smov [#allocation6]  }
   0x3   :  { %s16_s10 = sshll.u32 %s181_s9, 4  ;;  %s26_s12 = sshll.u32 %s182_s11, 4  ;;  %s17_s10 = int_to_ptr.vmem [resolvable:$true] %s16_s10  ;;  %s27_s12 = int_to_ptr.vmem [resolvable:$true] %s26_s12 }
   0x4   :  { %s109_s15 = scalar_lea.hbm %s239_s0, 128 }
   0x5   :  { %p110_p0 = scmp.ne.s32.totalorder %s239_s0, %s109_s15  ;;  %p113_p1 = scmp.lt.u32.totalorder %s109_s15, %s239_s0 }
   0x7   :  { %p115_p2 = pnand %p113_p1, %p110_p0 }
   0x9   :  { %118 = shalt.err (!%p115_p2)
}
   0xa   :  { %s119_s20 = scalar_lea.vmem %s17_s10, 128  ;;  %p124_p4 = scmp.lt.s32.totalorder %s17_s10, %s17_s10 }
   0xb   :  { %p120_p3 = scmp.ne.s32.totalorder %s17_s10, %s119_s20  ;;  %p125_p5 = scmp.lt.s32.totalorder %s119_s20, %s119_s20 }
   0xd   :  { %p126_p6 = por %p125_p5, %p124_p4 }
   0xf   :  { %p127_p7 = pnand %p126_p6, %p120_p3 }
  0x11   :  { %130 = shalt.err (!%p127_p7)
}
  0x12   :  { %19 = dma.hbm_to_vmem [thread:$0]  %s239_s0, 128, %s17_s10, [#allocation4]  }
  0x13   :  { %s131_s25 = scalar_lea.hbm %s240_s1, 128 }
  0x14   :  { %p132_p8 = scmp.ne.s32.totalorder %s240_s1, %s131_s25  ;;  %p135_p9 = scmp.lt.u32.totalorder %s131_s25, %s240_s1 }
  0x16   :  { %p137_p10 = pnand %p135_p9, %p132_p8 }
  0x18   :  { %140 = shalt.err (!%p137_p10)
}
  0x19   :  { %s141_s30 = scalar_lea.vmem %s27_s12, 128  ;;  %p146_p12 = scmp.lt.s32.totalorder %s27_s12, %s27_s12 }
  0x1a   :  { %p142_p11 = scmp.ne.s32.totalorder %s27_s12, %s141_s30  ;;  %p147_p13 = scmp.lt.s32.totalorder %s141_s30, %s141_s30 }
  0x1c   :  { %p148_p0 = por %p147_p13, %p146_p12 }
  0x1e   :  { %p149_p1 = pnand %p148_p0, %p142_p11 }
  0x20   :  { %152 = shalt.err (!%p149_p1)
}
  0x21   :  { %29 = dma.hbm_to_vmem [thread:$0]  %s240_s1, 128, %s27_s12, [#allocation7]  }
  0x22   :  { %175 = dma.done.wait [#allocation4], 128  }
  0x23   :  { %176 = vsyncadd [#allocation4], 4294967168 }
  0x24   :  { %177 = dma.done.wait [#allocation7], 128  }
  0x25   :  { %178 = vsyncadd [#allocation7], 4294967168  ;;  %v42_v0 = vld [vmem:[#allocation3] sm:$0xff]  ;;  %v43_v1 = vld [vmem:[#allocation6] sm:$0xff]  ;;  %v51_v4 = vlaneseq  ;;  %vm40_vm1 = vcmask 0   ;;  %v183_v15 = vmov 0.0  }
  0x26   :  { %v44_v2 = vsub.f32 %v42_v0, %v43_v1  ;;  %41 = vst.msk [vmem:[#allocation2] sm:$0x1] %vm40_vm1, %v183_v15  ;;  %s184_s4 = smov [#allocation8]  }
  0x27   :  { %v52_v8 = vshrl.u32 %v51_v4, 7  ;;  %v57_v9 = vand.u32 127, %v51_v4  ;;  %s89_s5 = sshll.u32 %s184_s4, 4  ;;  %s90_s5 = int_to_ptr.vmem [resolvable:$true] %s89_s5 }
  0x28   :  { %v45_v3 = vmul.f32 2.3570225, %v44_v2  ;;  %s153_s6 = scalar_lea.vmem %s90_s5, 16  ;;  %s157_s7 = scalar_lea.vmem %s90_s5, 32 }
  0x29   :  { %v58_v10 = vmul.u32 128, %v52_v8  ;;  %p154_p2 = scmp.ne.s32.totalorder %s90_s5, %s153_s6  ;;  %p158_p3 = scmp.lt.s32.totalorder %s90_s5, %s90_s5 }
  0x2a   :  { %105 = verf.f32 %v45_v3  ;;  %p159_p4 = scmp.lt.s32.totalorder %s157_s7, %s153_s6 }
  0x2b   :  { %v59_v11 = vadd.s32 %v58_v10, %v57_v9 }
  0x2c   :  { %p160_p5 = por %p159_p4, %p158_p3 }
  0x2d   :  { %vm60_vm0 = vcmp.lt.s32.totalorder %v59_v11, 256  ;;  %v62_v23 = vld [vmem:[#allocation2] sm:$0x1] }
  0x2e   :  { %p161_p6 = pnand %p160_p5, %p154_p2 }
  0x34   :  { %v106_v5 = vpop.eup %105 }
  0x35   :  { %v47_v6 = vand.u32 2147483647, %v106_v5 }
  0x37   :  { %v48_v7 = vsub.f32 1.0, %v47_v6 }
  0x39   :  { %107 = vlog2.f32 %v48_v7 }
  0x43   :  { %v108_v12 = vpop.eup %107 }
  0x44   :  { %v50_v13 = vmul.f32 0.6931472, %v108_v12 }
  0x46   :  { %v61_v14 = vsel %vm60_vm0, %v50_v13, 0.0 }
  0x47   :  { %63 = vadd.xlane.f32.xlu0 %v61_v14 }
  0xd4   :  { %v64_v16 = vpop.xlane.xlu0 %63 }
  0xd5   :  { %v65_v17 = vrot.slane %v64_v16, 4 }
  0xd7   :  { %v66_v18 = vadd.f32 %v65_v17, %v64_v16 }
  0xd9   :  { %v67_v19 = vrot.slane %v66_v18, 2 }
  0xdb   :  { %v68_v20 = vadd.f32 %v67_v19, %v66_v18 }
  0xdd   :  { %v69_v21 = vrot.slane %v68_v20, 1 }
  0xdf   :  { %v70_v22 = vadd.f32 %v69_v21, %v68_v20 }
  0xe1   :  { %99 = vpush %v70_v22 }
 0x112   :  { %s100_s1 = spop %99 }
 0x113   :  { %v72_v24 = vstv %s100_s1 }
 0x114   :  { %v73_v25 = vadd.f32 %v72_v24, %v62_v23 }
 0x116   :  { %75 = vst.msk [vmem:[#allocation2] sm:$0x1] %vm40_vm1, %v73_v25 }
 0x11d   :  { %v79_v26 = vld [vmem:[#allocation2] sm:$0x1] }
 0x11e   :  { %v80_v27 = vsub.f32 0.0, %v79_v26 }
 0x120   :  { %v81_v28 = vmul.f32 0.00390625, %v80_v27 }
 0x122   :  { %82 = vst.msk [vmem:[#allocation8] sm:$0x1] %vm40_vm1, %v81_v28 }
 0x123   :  { %164 = shalt.err (!%p161_p6)
}
 0x124   :  { %s165_s10 = scalar_lea.hbm %s241_s2, 16 }
 0x125   :  { %p166_p7 = scmp.ne.s32.totalorder %s241_s2, %s165_s10  ;;  %p169_p8 = scmp.lt.u32.totalorder %s165_s10, %s241_s2 }
 0x127   :  { %p171_p9 = pnand %p169_p8, %p166_p7 }
 0x129   :  { %174 = shalt.err (!%p171_p9)
}
 0x12a   :  { %92 = dma.vmem_to_hbm [thread:$0]  %s90_s5, 16, %s241_s2, [#allocation5]  }
 0x12b   :  { %179 = dma.done.wait [#allocation5], 16  }
 0x12c   :  { %180 = vsyncadd [#allocation5], 4294967280 }
 0x12d   :  { %96 = vsyncpa [#allocation4], 1 }
 0x12e   :  { %97 = vsyncpa [#allocation7], 1 }
 0x12f   :  { %98 = vsyncpa [#allocation5], 1 }

</bundles_post_ra>
